<compile_context>
chip_gen: v5e
topology: v5e:2x2
jax: 0.10.0
libtpu: 0.0.40
codegen_flags: <defaults>
</compile_context>

<pallas_src>
import jax
import jax.numpy as jnp
from jax import lax
from jax.experimental import pallas as pl
from jax.experimental.pallas import tpu as pltpu


def _make_slot_conv_kernel(Cin, Cout, H, W, KH, KW):
    """Build the im2col conv kernel (stride=1, 'same' padding), NCHW-native.

    Per grid step (one batch element):
      x_ref: (1, Cin, H*W)        flattened-spatial input (lane-dense)
      w_ref: (Cout, KH*KW*Cin)    weights, tap-major / channel-minor columns
      b_ref: (Cout, 1)            bias
      o_ref: (1, Cout, H*W)       output (Cout on sublanes, spatial on lanes)
    """
    HW = H * W
    pad_h, pad_w = KH // 2, KW // 2

    def kernel(x_ref, w_ref, b_ref, o_ref):
        x = x_ref[0]                                   # (Cin, HW) in vregs
        # column index of each lane within its image row (for W-boundary mask)
        w_idx = lax.broadcasted_iota(jnp.int32, (Cin, HW), 1) % W

        def shifted_tap(dh, dw):
            """y[:, h*W + w] = x[:, (h+dh)*W + (w+dw)], zero outside the image."""
            s = dh * W + dw
            if s > 0:
                y = jnp.concatenate(
                    [x[:, s:], jnp.zeros((Cin, s), x.dtype)], axis=1)
            elif s < 0:
                y = jnp.concatenate(
                    [jnp.zeros((Cin, -s), x.dtype), x[:, :s]], axis=1)
            else:
                y = x
            # flat shift already zero-fills the H boundary; mask the W boundary
            if dw != 0:
                valid = (w_idx + dw >= 0) & (w_idx + dw < W)
                y = jnp.where(valid, y, jnp.zeros_like(y))
            return y

        # im2col operand built entirely in registers: (KH*KW*Cin, HW)
        taps = [shifted_tap(kh - pad_h, kw - pad_w)
                for kh in range(KH) for kw in range(KW)]
        patches = jnp.concatenate(taps, axis=0)

        # One MXU push per grid step; lane-dense (HW) store, Cout on sublanes.
        acc = jnp.dot(w_ref[...], patches,
                      preferred_element_type=jnp.float32)   # (Cout, HW)
        acc = acc + b_ref[...]                                # (Cout, 1) bcast
        o_ref[0] = acc.astype(o_ref.dtype)

    return kernel


def slot_forward(x, weight_oihw, bias, stride=1):
    """Slot.forward: unwrap list input, apply the bound conv entity."""
    if isinstance(x, list):       # Slot.forward: x = x[0] if isinstance(x, list) else x
        x = x[0]

    assert stride == 1, "slot entity built with stride=1"   # TODO(synk): stride-2 ops
    N, Cin, H, W = x.shape
    Cout, Cin_w, KH, KW = weight_oihw.shape
    assert Cin == Cin_w
    HW = H * W
    K9C = KH * KW * Cin

    # Layout glue (all free / tiny): contiguous NCHW -> (N, Cin, H*W) reshape;
    # OIHW -> (Cout, KH*KW*Cin) with tap-major / channel-minor column order.
    x_flat = x.reshape(N, Cin, HW)
    w2 = jnp.transpose(weight_oihw, (0, 2, 3, 1)).reshape(Cout, K9C)
    b2 = bias.reshape(Cout, 1)

    kernel = _make_slot_conv_kernel(Cin, Cout, H, W, KH, KW)

    out_flat = pl.pallas_call(
        kernel,
        out_shape=jax.ShapeDtypeStruct((N, Cout, HW), x.dtype),
        grid=(N,),
        in_specs=[
            pl.BlockSpec((1, Cin, HW), lambda n: (n, 0, 0)),
            pl.BlockSpec((Cout, K9C), lambda n: (0, 0)),
            pl.BlockSpec((Cout, 1), lambda n: (0, 0)),
        ],
        out_specs=pl.BlockSpec((1, Cout, HW), lambda n: (n, 0, 0)),
        compiler_params=pltpu.CompilerParams(
            dimension_semantics=("parallel",)),
    )(x_flat, w2, b2)

    # Output is already NCHW-ordered; only a free reshape remains.
    return out_flat.reshape(N, Cout, H, W)


if __name__ == "__main__":
    key = jax.random.PRNGKey(0)
    k_x, k_w, k_b = jax.random.split(key, 3)

    # Slot(chn_in=4, chn_out=4, stride=1); input NCHW (batch=2, chn=4, 16x16)
    N, Cin, H, W = 2, 4, 16, 16
    Cout, KH, KW = 4, 3, 3

    x = jax.random.normal(k_x, (N, Cin, H, W), dtype=jnp.float32)
    weight = jax.random.normal(k_w, (Cout, Cin, KH, KW), dtype=jnp.float32) * 0.1
    bias = jax.random.normal(k_b, (Cout,), dtype=jnp.float32) * 0.1

    # Slot.forward accepts a list input as well
    out = slot_forward([x], weight, bias, stride=1)
    out = jax.block_until_ready(out)

    # reference check (plain JAX conv, NCHW / OIHW, full f32 precision)
    ref = jax.lax.conv_general_dilated(
        x, weight, window_strides=(1, 1), padding=((1, 1), (1, 1)),
        dimension_numbers=("NCHW", "OIHW", "NCHW"),
        precision=lax.Precision.HIGHEST,
    ) + bias.reshape(1, Cout, 1, 1)

    assert out.shape == (N, Cout, H, W)
    assert jnp.allclose(out, ref, atol=1e-3, rtol=1e-3)
    print("KERNEL_OK")
</pallas_src>

<mosaic_0001>
module attributes {stable_mosaic.version = 11 : i64} {
  func.func @kernel(%arg0: i32, %arg1: memref<1x4x256xf32, #tpu.memory_space<vmem>>, %arg2: memref<4x36xf32, #tpu.memory_space<vmem>>, %arg3: memref<4x1xf32, #tpu.memory_space<vmem>>, %arg4: memref<1x4x256xf32, #tpu.memory_space<vmem>>) attributes {dimension_semantics = [#tpu.dimension_semantics<parallel>], iteration_bounds = array<i64: 2>, scalar_prefetch = 0 : i64, scratch_operands = 0 : i64, tpu.core_type = #tpu.core_type<tc>, window_params = [{transform_indices = @transform_0, window_bounds = array<i64: 1, 4, 256>}, {pipeline_mode = #tpu.pipeline_mode<synchronous>, transform_indices = @transform_1, window_bounds = array<i64: 4, 36>}, {pipeline_mode = #tpu.pipeline_mode<synchronous>, transform_indices = @transform_2, window_bounds = array<i64: 4, 1>}, {transform_indices = @transform_3, window_bounds = array<i64: 1, 4, 256>}]} {
    %c0 = arith.constant 0 : index
    %c0_0 = arith.constant 0 : index
    %c0_1 = arith.constant 0 : index
    %0 = vector.load %arg1[%c0, %c0_0, %c0_1] : memref<1x4x256xf32, #tpu.memory_space<vmem>>, vector<1x4x256xf32>
    %1 = vector.shape_cast %0 : vector<1x4x256xf32> to vector<4x256xf32>
    %2 = tpu.iota {dimensions = array<i32: 1>} : vector<4x256xi32>
    %c16_i32 = arith.constant 16 : i32
    %c0_i32 = arith.constant 0 : i32
    %3 = arith.cmpi eq, %c16_i32, %c0_i32 : i32
    %c1_i32 = arith.constant 1 : i32
    %4 = arith.select %3, %c1_i32, %c16_i32 : i32
    %5 = vector.broadcast %4 : i32 to vector<4x256xi32>
    %6 = arith.remsi %2, %5 : vector<4x256xi32>
    %c0_i32_2 = arith.constant 0 : i32
    %7 = vector.broadcast %c0_i32_2 : i32 to vector<4x256xi32>
    %8 = arith.cmpi ne, %6, %7 : vector<4x256xi32>
    %c0_i32_3 = arith.constant 0 : i32
    %9 = vector.broadcast %c0_i32_3 : i32 to vector<4x256xi32>
    %10 = arith.cmpi slt, %6, %9 : vector<4x256xi32>
    %c0_i32_4 = arith.constant 0 : i32
    %11 = arith.cmpi slt, %4, %c0_i32_4 : i32
    %12 = vector.broadcast %11 : i1 to vector<4x256xi1>
    %13 = vector.broadcast %12 : vector<4x256xi1> to vector<4x256xi1>
    %14 = arith.xori %10, %13 : vector<4x256xi1>
    %15 = arith.andi %14, %8 : vector<4x256xi1>
    %16 = vector.broadcast %4 : i32 to vector<4x256xi32>
    %17 = arith.addi %6, %16 : vector<4x256xi32>
    %18 = arith.select %15, %17, %6 : vector<4x256xi1>, vector<4x256xi32>
    %cst = arith.constant 0.000000e+00 : f32
    %19 = vector.broadcast %cst : f32 to vector<4x17xf32>
    %20 = vector.extract_strided_slice %1 {offsets = [0, 0], sizes = [4, 239], strides = [1, 1]} : vector<4x256xf32> to vector<4x239xf32>
    %21 = tpu.concatenate %19, %20 in 1 : vector<4x17xf32>, vector<4x239xf32> -> vector<4x256xf32>
    %c-1_i32 = arith.constant -1 : i32
    %22 = vector.broadcast %c-1_i32 : i32 to vector<4x256xi32>
    %23 = arith.addi %18, %22 : vector<4x256xi32>
    %c0_i32_5 = arith.constant 0 : i32
    %24 = vector.broadcast %c0_i32_5 : i32 to vector<4x256xi32>
    %25 = arith.cmpi sge, %23, %24 : vector<4x256xi32>
    %c-1_i32_6 = arith.constant -1 : i32
    %26 = vector.broadcast %c-1_i32_6 : i32 to vector<4x256xi32>
    %27 = arith.addi %18, %26 : vector<4x256xi32>
    %c16_i32_7 = arith.constant 16 : i32
    %28 = vector.broadcast %c16_i32_7 : i32 to vector<4x256xi32>
    %29 = arith.cmpi slt, %27, %28 : vector<4x256xi32>
    %30 = arith.andi %25, %29 : vector<4x256xi1>
    %cst_8 = arith.constant 0.000000e+00 : f32
    %31 = vector.broadcast %cst_8 : f32 to vector<4x256xf32>
    %32 = arith.select %30, %21, %31 : vector<4x256xi1>, vector<4x256xf32>
    %cst_9 = arith.constant 0.000000e+00 : f32
    %33 = vector.broadcast %cst_9 : f32 to vector<4x16xf32>
    %34 = vector.extract_strided_slice %1 {offsets = [0, 0], sizes = [4, 240], strides = [1, 1]} : vector<4x256xf32> to vector<4x240xf32>
    %35 = tpu.concatenate %33, %34 in 1 : vector<4x16xf32>, vector<4x240xf32> -> vector<4x256xf32>
    %cst_10 = arith.constant 0.000000e+00 : f32
    %36 = vector.broadcast %cst_10 : f32 to vector<4x15xf32>
    %37 = vector.extract_strided_slice %1 {offsets = [0, 0], sizes = [4, 241], strides = [1, 1]} : vector<4x256xf32> to vector<4x241xf32>
    %38 = tpu.concatenate %36, %37 in 1 : vector<4x15xf32>, vector<4x241xf32> -> vector<4x256xf32>
    %c1_i32_11 = arith.constant 1 : i32
    %39 = vector.broadcast %c1_i32_11 : i32 to vector<4x256xi32>
    %40 = arith.addi %18, %39 : vector<4x256xi32>
    %c0_i32_12 = arith.constant 0 : i32
    %41 = vector.broadcast %c0_i32_12 : i32 to vector<4x256xi32>
    %42 = arith.cmpi sge, %40, %41 : vector<4x256xi32>
    %c1_i32_13 = arith.constant 1 : i32
    %43 = vector.broadcast %c1_i32_13 : i32 to vector<4x256xi32>
    %44 = arith.addi %18, %43 : vector<4x256xi32>
    %c16_i32_14 = arith.constant 16 : i32
    %45 = vector.broadcast %c16_i32_14 : i32 to vector<4x256xi32>
    %46 = arith.cmpi slt, %44, %45 : vector<4x256xi32>
    %47 = arith.andi %42, %46 : vector<4x256xi1>
    %cst_15 = arith.constant 0.000000e+00 : f32
    %48 = vector.broadcast %cst_15 : f32 to vector<4x256xf32>
    %49 = arith.select %47, %38, %48 : vector<4x256xi1>, vector<4x256xf32>
    %cst_16 = arith.constant 0.000000e+00 : f32
    %50 = vector.broadcast %cst_16 : f32 to vector<4x1xf32>
    %51 = vector.extract_strided_slice %1 {offsets = [0, 0], sizes = [4, 255], strides = [1, 1]} : vector<4x256xf32> to vector<4x255xf32>
    %52 = tpu.concatenate %50, %51 in 1 : vector<4x1xf32>, vector<4x255xf32> -> vector<4x256xf32>
    %c-1_i32_17 = arith.constant -1 : i32
    %53 = vector.broadcast %c-1_i32_17 : i32 to vector<4x256xi32>
    %54 = arith.addi %18, %53 : vector<4x256xi32>
    %c0_i32_18 = arith.constant 0 : i32
    %55 = vector.broadcast %c0_i32_18 : i32 to vector<4x256xi32>
    %56 = arith.cmpi sge, %54, %55 : vector<4x256xi32>
    %c-1_i32_19 = arith.constant -1 : i32
    %57 = vector.broadcast %c-1_i32_19 : i32 to vector<4x256xi32>
    %58 = arith.addi %18, %57 : vector<4x256xi32>
    %c16_i32_20 = arith.constant 16 : i32
    %59 = vector.broadcast %c16_i32_20 : i32 to vector<4x256xi32>
    %60 = arith.cmpi slt, %58, %59 : vector<4x256xi32>
    %61 = arith.andi %56, %60 : vector<4x256xi1>
    %cst_21 = arith.constant 0.000000e+00 : f32
    %62 = vector.broadcast %cst_21 : f32 to vector<4x256xf32>
    %63 = arith.select %61, %52, %62 : vector<4x256xi1>, vector<4x256xf32>
    %64 = vector.extract_strided_slice %1 {offsets = [0, 1], sizes = [4, 255], strides = [1, 1]} : vector<4x256xf32> to vector<4x255xf32>
    %cst_22 = arith.constant 0.000000e+00 : f32
    %65 = vector.broadcast %cst_22 : f32 to vector<4x1xf32>
    %66 = tpu.concatenate %64, %65 in 1 : vector<4x255xf32>, vector<4x1xf32> -> vector<4x256xf32>
    %c1_i32_23 = arith.constant 1 : i32
    %67 = vector.broadcast %c1_i32_23 : i32 to vector<4x256xi32>
    %68 = arith.addi %18, %67 : vector<4x256xi32>
    %c0_i32_24 = arith.constant 0 : i32
    %69 = vector.broadcast %c0_i32_24 : i32 to vector<4x256xi32>
    %70 = arith.cmpi sge, %68, %69 : vector<4x256xi32>
    %c1_i32_25 = arith.constant 1 : i32
    %71 = vector.broadcast %c1_i32_25 : i32 to vector<4x256xi32>
    %72 = arith.addi %18, %71 : vector<4x256xi32>
    %c16_i32_26 = arith.constant 16 : i32
    %73 = vector.broadcast %c16_i32_26 : i32 to vector<4x256xi32>
    %74 = arith.cmpi slt, %72, %73 : vector<4x256xi32>
    %75 = arith.andi %70, %74 : vector<4x256xi1>
    %cst_27 = arith.constant 0.000000e+00 : f32
    %76 = vector.broadcast %cst_27 : f32 to vector<4x256xf32>
    %77 = arith.select %75, %66, %76 : vector<4x256xi1>, vector<4x256xf32>
    %78 = vector.extract_strided_slice %1 {offsets = [0, 15], sizes = [4, 241], strides = [1, 1]} : vector<4x256xf32> to vector<4x241xf32>
    %cst_28 = arith.constant 0.000000e+00 : f32
    %79 = vector.broadcast %cst_28 : f32 to vector<4x15xf32>
    %80 = tpu.concatenate %78, %79 in 1 : vector<4x241xf32>, vector<4x15xf32> -> vector<4x256xf32>
    %c-1_i32_29 = arith.constant -1 : i32
    %81 = vector.broadcast %c-1_i32_29 : i32 to vector<4x256xi32>
    %82 = arith.addi %18, %81 : vector<4x256xi32>
    %c0_i32_30 = arith.constant 0 : i32
    %83 = vector.broadcast %c0_i32_30 : i32 to vector<4x256xi32>
    %84 = arith.cmpi sge, %82, %83 : vector<4x256xi32>
    %c-1_i32_31 = arith.constant -1 : i32
    %85 = vector.broadcast %c-1_i32_31 : i32 to vector<4x256xi32>
    %86 = arith.addi %18, %85 : vector<4x256xi32>
    %c16_i32_32 = arith.constant 16 : i32
    %87 = vector.broadcast %c16_i32_32 : i32 to vector<4x256xi32>
    %88 = arith.cmpi slt, %86, %87 : vector<4x256xi32>
    %89 = arith.andi %84, %88 : vector<4x256xi1>
    %cst_33 = arith.constant 0.000000e+00 : f32
    %90 = vector.broadcast %cst_33 : f32 to vector<4x256xf32>
    %91 = arith.select %89, %80, %90 : vector<4x256xi1>, vector<4x256xf32>
    %92 = vector.extract_strided_slice %1 {offsets = [0, 16], sizes = [4, 240], strides = [1, 1]} : vector<4x256xf32> to vector<4x240xf32>
    %cst_34 = arith.constant 0.000000e+00 : f32
    %93 = vector.broadcast %cst_34 : f32 to vector<4x16xf32>
    %94 = tpu.concatenate %92, %93 in 1 : vector<4x240xf32>, vector<4x16xf32> -> vector<4x256xf32>
    %95 = vector.extract_strided_slice %1 {offsets = [0, 17], sizes = [4, 239], strides = [1, 1]} : vector<4x256xf32> to vector<4x239xf32>
    %cst_35 = arith.constant 0.000000e+00 : f32
    %96 = vector.broadcast %cst_35 : f32 to vector<4x17xf32>
    %97 = tpu.concatenate %95, %96 in 1 : vector<4x239xf32>, vector<4x17xf32> -> vector<4x256xf32>
    %c1_i32_36 = arith.constant 1 : i32
    %98 = vector.broadcast %c1_i32_36 : i32 to vector<4x256xi32>
    %99 = arith.addi %18, %98 : vector<4x256xi32>
    %c0_i32_37 = arith.constant 0 : i32
    %100 = vector.broadcast %c0_i32_37 : i32 to vector<4x256xi32>
    %101 = arith.cmpi sge, %99, %100 : vector<4x256xi32>
    %c1_i32_38 = arith.constant 1 : i32
    %102 = vector.broadcast %c1_i32_38 : i32 to vector<4x256xi32>
    %103 = arith.addi %18, %102 : vector<4x256xi32>
    %c16_i32_39 = arith.constant 16 : i32
    %104 = vector.broadcast %c16_i32_39 : i32 to vector<4x256xi32>
    %105 = arith.cmpi slt, %103, %104 : vector<4x256xi32>
    %106 = arith.andi %101, %105 : vector<4x256xi1>
    %cst_40 = arith.constant 0.000000e+00 : f32
    %107 = vector.broadcast %cst_40 : f32 to vector<4x256xf32>
    %108 = arith.select %106, %97, %107 : vector<4x256xi1>, vector<4x256xf32>
    %109 = tpu.concatenate %32, %35, %49, %63, %1, %77, %91, %94, %108 in 0 : vector<4x256xf32>, vector<4x256xf32>, vector<4x256xf32>, vector<4x256xf32>, vector<4x256xf32>, vector<4x256xf32>, vector<4x256xf32>, vector<4x256xf32>, vector<4x256xf32> -> vector<36x256xf32>
    %c0_41 = arith.constant 0 : index
    %c0_42 = arith.constant 0 : index
    %110 = vector.load %arg2[%c0_41, %c0_42] : memref<4x36xf32, #tpu.memory_space<vmem>>, vector<4x36xf32>
    %cst_43 = arith.constant dense<0.000000e+00> : vector<4x256xf32>
    %111 = tpu.matmul %110, %109, %cst_43 {dimension_numbers = #tpu.dot_dimension_numbers<[1], [0], [0], [1], [0, 0, 1, 1], [], []>} : vector<4x36xf32>, vector<36x256xf32>, vector<4x256xf32> -> vector<4x256xf32>
    %c0_44 = arith.constant 0 : index
    %c0_45 = arith.constant 0 : index
    %112 = vector.load %arg3[%c0_44, %c0_45] : memref<4x1xf32, #tpu.memory_space<vmem>>, vector<4x1xf32>
    %113 = vector.broadcast %112 : vector<4x1xf32> to vector<4x256xf32>
    %114 = arith.addf %111, %113 : vector<4x256xf32>
    %c0_46 = arith.constant 0 : index
    %c0_47 = arith.constant 0 : index
    %c0_48 = arith.constant 0 : index
    %115 = vector.load %arg4[%c0_46, %c0_47, %c0_48] : memref<1x4x256xf32, #tpu.memory_space<vmem>>, vector<1x4x256xf32>
    %116 = vector.shape_cast %115 : vector<1x4x256xf32> to vector<4x256xf32>
    %117 = vector.shape_cast %114 : vector<4x256xf32> to vector<1x4x256xf32>
    tpu.vector_store %arg4[%c0_46, %c0_47, %c0_48], %117 {strides = array<i32>} : memref<1x4x256xf32, #tpu.memory_space<vmem>>, vector<1x4x256xf32>,
    return
  }
  func.func @transform_0(%arg0: i32) -> (i32, i32, i32) {
    %c0_i32 = arith.constant 0 : i32
    %c0_i32_0 = arith.constant 0 : i32
    %c0_i32_1 = arith.constant 0 : i32
    return %arg0, %c0_i32, %c0_i32_0 : i32, i32, i32
  }
  func.func @transform_1(%arg0: i32) -> (i32, i32) {
    %c0_i32 = arith.constant 0 : i32
    %c0_i32_0 = arith.constant 0 : i32
    %c0_i32_1 = arith.constant 0 : i32
    return %c0_i32, %c0_i32_0 : i32, i32
  }
  func.func @transform_2(%arg0: i32) -> (i32, i32) {
    %c0_i32 = arith.constant 0 : i32
    %c0_i32_0 = arith.constant 0 : i32
    %c0_i32_1 = arith.constant 0 : i32
    return %c0_i32, %c0_i32_0 : i32, i32
  }
  func.func @transform_3(%arg0: i32) -> (i32, i32, i32) {
    %c0_i32 = arith.constant 0 : i32
    %c0_i32_0 = arith.constant 0 : i32
    %c0_i32_1 = arith.constant 0 : i32
    return %arg0, %c0_i32, %c0_i32_0 : i32, i32, i32
  }
}

</mosaic_0001>

<bundles_post_ra>
// kernel: tpu_custom_call.1
= control target key start
LH: loop header
LB: loop body
LE: loop exit
PB: predicated region body
PF: predicated region fallthrough
CT: control target
= control target key end

     0   :  { %8 = vsyncpa [#allocation3], 0  ;;  %s958_s0 = inlined_call_operand.hbm [shape: f32[2,4,256], index: 0, kind: input, shape index: {}]   ;;  %s959_s1 = inlined_call_operand.vmem [shape: f32[4,36], index: 1, kind: input, shape index: {}]   ;;  %s960_s2 = inlined_call_operand.vmem [shape: f32[4,1], index: 2, kind: input, shape index: {}]   ;;  %s961_s3 = inlined_call_operand.hbm [shape: f32[2,4,256], index: 3, kind: output, shape index: {}]  }
   0x1   :  { %10 = vsyncpa [#allocation3 + $0x1], 0 }
   0x2   :  { %11 = vsyncpa [#allocation4], 0 }
   0x3   :  { %13 = vsyncpa [#allocation4 + $0x1], 0  ;;  %s764_s12 = smov 0   ;;  %s766_s13 = smov 0  }
   0x4   :  { %s768_s14 = smov 0   ;;  %s770_s15 = smov 0  }
   0x5 LB: > { %s785_s16 = sadd.s32 4294967295, %s733_s15   ;;  %s526_s17 = sadd.s32 4294967294, %s733_s15   ;;  %s733_s15 = sphi %s770_s15, %s971_s15   ;;  %s729_s14 = sphi %s768_s14, %s970_s14   ;;  %s725_s13 = sphi %s766_s13, %s969_s13   ;;  %s721_s12 = sphi %s764_s12, %s968_s12  }
   0x6   : > { %s789_s18 = sadd.s32 1, %s733_s15   ;;  %s26_s19 = sadd.s32 1, %s729_s14 }
   0x7   : > { %s23_s20 = ssub.s32 %s733_s15, %s789_s18  ;;  %p33_p0 = scmp.ne.s32.totalorder %s729_s14, %s725_s13 }
   0x8   : > { %p24_p1 = scmp.eq.s32.totalorder %s23_s20, 0  ;;  %p34_p2 = scmp.eq.s32.totalorder %s733_s15, 0 }
   0x9   : > { %p39_p3 = scmp.ne.s32.totalorder %s725_s13, %s721_s12  ;;  %p40_p4 = scmp.eq.s32.totalorder %s785_s16, 0 }
   0xa   : > { %s801_s21 = scalar_select %p24_p1, %s729_s14, %s26_s19  }
   0xb   : > { %p803_p5 = por %p34_p2, %p33_p0  ;;  %p807_p6 = por %p40_p4, %p39_p3 }
   0xc   : > { %p105_p7 = scmp.eq.s32.totalorder %s785_s16, 1  ;;  %p111_p8 = scmp.eq.s32.totalorder %s526_s17, 1 }
   0xd   : > { %p558_p10 = scmp.lt.s32.totalorder %s733_s15, 2  ;;  %s137_s26 = sand.u32 1, %s729_s14  }
   0xe   : > { %p814_p11 = por %p105_p7, %p33_p0  ;;  %p818_p12 = por %p111_p8, %p39_p3 }
   0xf   : > { %s544_s27 = sshll.u32 %s733_s15, 3  ;;  %s529_s28 = sshll.u32 %s137_s26, 3 }
  0x10   : > { %s146_s4 = scalar_lea.hbm %s958_s0, %s544_s27  ;;  %s141_s6 = scalar_lea.vmem [#allocation2], %s529_s28 }
  0x11   : > { %s148_s5 = sshll.u32 %s146_s4, 4  ;;  %s150_s7 = sshll.u32 %s141_s6, 4  ;;  %s149_s5 = int_to_ptr.hbm [resolvable:$true] %s148_s5  ;;  %s151_s7 = int_to_ptr.vmem [resolvable:$true] %s150_s7 }
  0x12   : > { %p829_p13 = pnand %p558_p10, %p803_p5  ;;  %p532_p0 = scmp.ge.s32.totalorder %s733_s15, 1 }
  0x13   : > { %p155_p1 = scmp.lt.s32.totalorder %s733_s15, 3  ;;  %s138_s9 = scalar_lea.sflag [#allocation3], %s137_s26 }
  0x14   : > { %s637_s10 = sshra.s32 %s149_s5, 4  ;;  %p641_p3 = pneg %p829_p13  ;;  %s638_s10 = int_to_ptr.hbm [resolvable:$true] %s637_s10 }
  0x15   : > { %s639_s11 = scalar_lea.hbm %s638_s10, 8  ;;  %s644_s20 = scalar_lea.hbm %s958_s0, 16 }
  0x16   : > { %p640_p2 = scmp.ne.s32.totalorder %s638_s10, %s639_s11  ;;  %p645_p5 = scmp.lt.s32.totalorder %s638_s10, %s958_s0 }
  0x17   : > { %p646_p8 = scmp.lt.s32.totalorder %s644_s20, %s639_s11 }
  0x18   : > { %p642_p4 = pnand %p641_p3, %p640_p2 }
  0x19   : > { %p647_p10 = por %p646_p8, %p645_p5 }
  0x1a   : > { %p643_p7 = pneg %p642_p4 }
  0x1c   : > { %p648_p9 = pnand %p647_p10, %p643_p7 }
  0x1e   : > { %651 = shalt.err (!%p648_p9)
}
  0x1f   : > { %553 = dma.hbm_to_vmem [thread:$0]  (!%p829_p13), %s149_s5, 128, %s151_s7, %s138_s9  }
  0x20   : > { %p156_p2 = pnand %p532_p0, %p155_p1 }
  0x21   : > { %s850_s26 = sand.u32 (!%p156_p2), 1, %s725_s13  }
  0x22   : > { %159 = sbr.rel (%p156_p2) target bundleno = 372 (0x174), region = 32  ;;  %s533_s28 = sshll.u32 (!%p156_p2), %s850_s26, 3 }
  0x23   : > { %s162_s29 = scalar_lea.sflag (!%p156_p2), [#allocation3], %s850_s26  ;;  %s165_s30 = scalar_lea.vmem (!%p156_p2), [#allocation2], %s533_s28 }
  0x27   : > { %712 = dma.done.wait (%p807_p6), %s162_s29, 128  }
  0x28   : > { %714 = vsyncadd (%p807_p6), %s162_s29, 4294967168  ;;  %v189_v0 = vld [vmem:[%s165_s30] sm:$0xff]  ;;  %s735_s23 = smov 127   ;;  %s736_s4 = smov 1   ;;  %v190_v24 = vlaneseq  ;;  %v377_v31 = vld [vmem:[%s960_s2] sm:$0xf] }
  0x29   : > { %218 = vst [vmem:[#allocation1] ss:$2 sm:$0xff] %v189_v0  ;;  %s737_s5 = smov 113   ;;  %s738_s6 = smov 112   ;;  %v743_v32 = vmov 0   ;;  %vm294_vm0 = vcmask 1039360  }
  0x2a   : > { %s739_s7 = smov 16   ;;  %s740_s8 = smov 111   ;;  %v191_v25 = vand.u32 127, %v190_v24  ;;  %636 = vset.pattern.permute.xlu0 %v743_v32  ;;  %vm322_vm1 = vcmask 916480   ;;  %vm308_vm4 = vcmask 924672   ;;  %vm333_vm6 = vcmask 908288  }
  0x2b   : > { %s741_s9 = smov 17   ;;  %s742_s10 = smov 15   ;;  %vm280_vm8 = vcmask 7168   ;;  %vm367_vm9 = vcmask 1043456   ;;  %vm247_vm10 = vcmask 130048   ;;  %vm225_vm11 = vcmask 138240  }
  0x2c   : > { %v192_v27 = vadd.s32 128, %v191_v25  ;;  %v197_v29 = vand.u32 15, %v191_v25  ;;  %vm258_vm12 = vcmask 121856   ;;  %vm383_vm13 = vcmask 293888   ;;  %s545_s22 = sshll.u32 %s785_s16, 3  ;;  %s440_s16 = scalar_lea.sflag [#allocation4], %s850_s26 }
  0x2d   : > { %s451_s30 = scalar_lea.hbm %s961_s3, %s545_s22 }
  0x2e   : > { %v204_v30 = vand.u32 15, %v192_v27  ;;  %v865_v33 = vadd.s32 1, %v197_v29  ;;  %v869_v38 = vadd.s32 4294967295, %v197_v29 }
  0x30   : > { %v219_v1 = vld.sshfl [vmem:[#allocation1] sm:$0xff pattern:$0x75316420]  ;;  %v220_v2 = vld.sshfl [vmem:[#allocation1 + $0x8] sm:$0xff pattern:$0x75316420] }
  0x31   : > { %240 = vst [vmem:[#allocation1] ss:$2 sm:$0xff] %v189_v0  ;;  %v631_v22 = vpack.i.bf16 %v220_v2, %v219_v1  ;;  %v867_v34 = vadd.s32 1, %v204_v30  ;;  %v871_v41 = vadd.s32 4294967295, %v204_v30  ;;  %vm267_vm2 = vcmp.lt.s32.totalorder %v865_v33, 16 }
  0x32   : > { %vm232_vm5 = vcmp.ge.s32.totalorder %v869_v38, 0 }
  0x33   : > { %vm268_vm3 = vcmp.lt.s32.totalorder %v867_v34, 16  ;;  %vm233_vm7 = vcmp.ge.s32.totalorder %v871_v41, 0 }
  0x38   : > { %v241_v3 = vld.sshfl [vmem:[#allocation1] sm:$0xff pattern:$0x75316420]  ;;  %v242_v4 = vld.sshfl [vmem:[#allocation1 + $0x8] sm:$0xff pattern:$0x75316420] }
  0x39   : > { %251 = vst [vmem:[#allocation1] ss:$2 sm:$0xff] %v189_v0  ;;  %v626_v16 = vpack.i.bf16 %v242_v4, %v241_v3 }
  0x40   : > { %v252_v5 = vld.sshfl [vmem:[#allocation1] sm:$0xff pattern:$0x75316420]  ;;  %v253_v6 = vld.sshfl [vmem:[#allocation1 + $0x8] sm:$0xff pattern:$0x75316420] }
  0x41   : > { %273 = vst [vmem:[#allocation1] ss:$2 sm:$0xff] %v189_v0  ;;  %v621_v23 = vpack.i.bf16 %v253_v6, %v252_v5 }
  0x48   : > { %v274_v7 = vld.sshfl [vmem:[#allocation1] sm:$0xff pattern:$0x75316420]  ;;  %v275_v8 = vld.sshfl [vmem:[#allocation1 + $0x8] sm:$0xff pattern:$0x75316420] }
  0x49   : > { %287 = vst [vmem:[#allocation1] ss:$2 sm:$0xff] %v189_v0  ;;  %v601_v12 = vpack.i.bf16 %v275_v8, %v274_v7 }
  0x4b   : > { %602 = vrot.lane.b32.xlu2 %v601_v12, %s736_s4 }
  0x50   : > { %v288_v9 = vld.sshfl [vmem:[#allocation1] sm:$0xff pattern:$0x75316420]  ;;  %v289_v10 = vld.sshfl [vmem:[#allocation1 + $0x8] sm:$0xff pattern:$0x75316420] }
  0x51   : > { %v606_v11 = vpack.i.bf16 %v288_v9, %v289_v10  ;;  %301 = vst [vmem:[#allocation1] ss:$2 sm:$0xff] %v189_v0 }
  0x53   : > { %607 = vrot.lane.b32.xlu1 %v606_v11, %s735_s23  ;;  %s188_s23 = scalar_lea.vmem [#allocation5], %s533_s28  ;;  %s687_s28 = scalar_lea.hbm %s961_s3, 16 }
  0x54   : > { %s453_s4 = sshll.u32 %s188_s23, 4  ;;  %s454_s4 = int_to_ptr.vmem [resolvable:$true] %s453_s4 }
  0x58   : > { %v302_v13 = vld.sshfl [vmem:[#allocation1] sm:$0xff pattern:$0x75316420]  ;;  %v303_v14 = vld.sshfl [vmem:[#allocation1 + $0x8] sm:$0xff pattern:$0x75316420] }
  0x59   : > { %315 = vst [vmem:[#allocation1] ss:$2 sm:$0xff] %v189_v0  ;;  %v611_v15 = vpack.i.bf16 %v302_v13, %v303_v14 }
  0x5b   : > { %612 = vrot.lane.b32.xlu1 %v611_v15, %s737_s5  ;;  %s455_s5 = sshll.u32 %s451_s30, 4  ;;  %s456_s5 = int_to_ptr.hbm [resolvable:$true] %s455_s5 }
  0x60   : > { %v316_v17 = vld.sshfl [vmem:[#allocation1] sm:$0xff pattern:$0x75316420]  ;;  %v317_v18 = vld.sshfl [vmem:[#allocation1 + $0x8] sm:$0xff pattern:$0x75316420] }
  0x61   : > { %v616_v19 = vpack.i.bf16 %v316_v17, %v317_v18  ;;  %326 = vst [vmem:[#allocation1] ss:$2 sm:$0xff] %v189_v0 }
  0x63   : > { %617 = vrot.lane.b32.xlu0 %v616_v19, %s738_s6  ;;  %627 = vrot.lane.b32.xlu1 %v626_v16, %s739_s7  ;;  %s681_s6 = sshra.s32 %s456_s5, 4  ;;  %s682_s6 = int_to_ptr.hbm [resolvable:$true] %s681_s6 }
  0x64   : > { %s683_s7 = scalar_lea.hbm %s682_s6, 8  ;;  %p688_p0 = scmp.lt.s32.totalorder %s682_s6, %s961_s3 }
  0x65   : > { %p684_p6 = scmp.ne.s32.totalorder %s682_s6, %s683_s7  ;;  %p689_p1 = scmp.lt.s32.totalorder %s687_s28, %s683_s7 }
  0x67   : > { %p685_p9 = pnand %p684_p6, %p814_p11  ;;  %p690_p3 = por %p689_p1, %p688_p0 }
  0x68   : > { %v328_v20 = vld.sshfl [vmem:[#allocation1 + $0x8] sm:$0xff pattern:$0x75316420]  ;;  %v327_v21 = vld.sshfl [vmem:[#allocation1] sm:$0xff pattern:$0x75316420] }
  0x69   : > { %329 = vrot.lane.b32.xlu2 %v327_v21, %s740_s8  ;;  %351 = vst [vmem:[#allocation1] ss:$2 sm:$0xff] %v189_v0  ;;  %p686_p13 = pneg %p685_p9 }
  0x6b   : > { %331 = vrot.lane.b32.xlu0 %v328_v20, %s740_s8  ;;  %p691_p4 = pnand %p690_p3, %p686_p13 }
  0x70   : > { %v352_v5 = vld.sshfl [vmem:[#allocation1] sm:$0xff pattern:$0x75316420]  ;;  %v353_v8 = vld.sshfl [vmem:[#allocation1 + $0x8] sm:$0xff pattern:$0x75316420] }
  0x71   : > { %632 = vrot.lane.b32.xlu2 %v631_v22, %s741_s9 }
  0x73   : > { %622 = vrot.lane.b32.xlu0 %v621_v23, %s742_s10 }
  0x7b   : > { %380 = vperm.xlu0 %636, %v377_v31  }
  0xa5   : > { %v860_v28 = vpop.permute.xlu2 %602 }
  0xa6   : > { %v605_v54 = vunpack.i.h.bf16 %v860_v28  ;;  %v604_v55 = vunpack.i.l.bf16 %v860_v28 }
  0xa8   : > { %v284_v13 = vsel %vm280_vm8, 0.0, %v604_v55  ;;  %v281_v14 = vsel %vm280_vm8, %v604_v55, %v605_v54 }
  0xa9   : > { %v285_v21 = vsel %vm232_vm5, %v284_v13, 0.0  ;;  %v286_v23 = vsel %vm233_vm7, %v281_v14, 0.0 }
  0xaa   : > { %v347_v31 = vrot.slane %v285_v21, 4 }
  0xc3   : > { %v330_v40 = vpop.permute.xlu2 %329 }
  0xc5   : > { %v608_v26 = vpop.permute.xlu1 %607 }
  0xc6   : > { %v610_v35 = vunpack.i.h.bf16 %v608_v26  ;;  %v609_v36 = vunpack.i.l.bf16 %v608_v26 }
  0xc8   : > { %v298_v44 = vsel %vm294_vm0, %v609_v36, 0.0  ;;  %v295_v47 = vsel %vm294_vm0, %v610_v35, %v609_v36  ;;  %v348_v35 = vrot.slane %v286_v23, 4 }
  0xc9   : > { %v299_v49 = vsel %vm267_vm2, %v295_v47, 0.0  ;;  %v300_v50 = vsel %vm268_vm3, %v298_v44, 0.0 }
  0xca   : > { %v358_v60 = vrot.slane %v299_v49, 4  ;;  %v359_v61 = vrot.slane %v300_v50, 4 }
  0xcb   : > { %v633_v62 = vpop.permute.xlu2 %632 }
  0xcc   : > { %v635_v9 = vunpack.i.h.bf16 %v633_v62  ;;  %v634_v10 = vunpack.i.l.bf16 %v633_v62  ;;  %v372_v15 = vsel %vm367_vm9, %v352_v5, %v358_v60  ;;  %v373_v16 = vsel %vm367_vm9, %v353_v8, %v359_v61 }
  0xcd   : > { %v613_v37 = vpop.permute.xlu1 %612 }
  0xce   : > { %v615_v45 = vunpack.i.h.bf16 %v613_v37  ;;  %v614_v46 = vunpack.i.l.bf16 %v613_v37  ;;  %v229_v19 = vsel %vm225_vm11, 0.0, %v634_v10  ;;  %v226_v20 = vsel %vm225_vm11, %v634_v10, %v635_v9 }
  0xcf   : > { %v238_v28 = vsel %vm232_vm5, %v229_v19, 0.0  ;;  %v239_v29 = vsel %vm233_vm7, %v226_v20, 0.0 }
  0xd0   : > { %v309_v52 = vsel %vm308_vm4, %v615_v45, %v614_v46  ;;  %v312_v53 = vsel %vm308_vm4, %v614_v46, 0.0 }
  0xd1   : > { %v313_v1 = vsel %vm232_vm5, %v309_v52, 0.0  ;;  %v314_v2 = vsel %vm233_vm7, %v312_v53, 0.0 }
  0xd5   : > { %v618_v39 = vpop.permute.xlu0 %617  ;;  %v628_v56 = vpop.permute.xlu1 %627 }
  0xd6   : > { %v620_v42 = vunpack.i.h.bf16 %v618_v39  ;;  %v619_v43 = vunpack.i.l.bf16 %v618_v39  ;;  %v630_v6 = vunpack.i.h.bf16 %v628_v56  ;;  %v629_v7 = vunpack.i.l.bf16 %v628_v56 }
  0xd8   : > { %v325_v48 = vsel %vm322_vm1, %v619_v43, 0.0  ;;  %v323_v51 = vsel %vm322_vm1, %v620_v42, %v619_v43  ;;  %v248_v17 = vsel %vm247_vm10, %v629_v7, %v630_v6  ;;  %v250_v18 = vsel %vm247_vm10, 0.0, %v629_v7  ;;  %v376_v42 = vld [vmem:[%s959_s1] sm:$0xf] }
  0xd9   : > { %v364_v57 = vrot.slane %v325_v48, 4  ;;  %v363_v59 = vrot.slane %v323_v51, 4  ;;  %v341_v26 = vrot.slane %v250_v18, 4  ;;  %v342_v27 = vrot.slane %v248_v17, 4 }
  0xdb   : > { %v374_v11 = vsel %vm367_vm9, %v313_v1, %v363_v59  ;;  %v375_v12 = vsel %vm367_vm9, %v314_v2, %v364_v57  ;;  %v368_v38 = vsel %vm367_vm9, %v238_v28, %v341_v26  ;;  %v369_v41 = vsel %vm367_vm9, %v239_v29, %v342_v27 }
  0xdd   : > { %v332_v58 = vpop.permute.xlu0 %331 }
  0xde   : > { %v334_v63 = vsel %vm333_vm6, %v330_v40, %v332_v58  ;;  %v337_v0 = vsel %vm333_vm6, %v332_v58, 0.0 }
  0xdf   : > { %v338_v3 = vsel %vm267_vm2, %v334_v63, 0.0  ;;  %v339_v4 = vsel %vm268_vm3, %v337_v0, 0.0 }
  0xe0   : > { %535 = vmatpush.msk.msra.mxu0 %vm367_vm9, %v338_v3  ;;  %537 = vmatpush.msk.msra.mxu1 %vm367_vm9, %v339_v4 }
  0xe2   : > { %405 = vmatpush.msra.mxu0 %v374_v11  ;;  %425 = vmatpush.msra.mxu1 %v375_v12 }
  0xe4   : > { %406 = vmatpush.msra.mxu0 %v372_v15  ;;  %426 = vmatpush.msra.mxu1 %v373_v16 }
  0xe5   : > { %v623_v22 = vpop.permute.xlu0 %622 }
  0xe6   : > { %v625_v24 = vunpack.i.h.bf16 %v623_v22  ;;  %v624_v25 = vunpack.i.l.bf16 %v623_v22 }
  0xe8   : > { %v262_v30 = vsel %vm258_vm12, 0.0, %v624_v25  ;;  %v259_v32 = vsel %vm258_vm12, %v624_v25, %v625_v24 }
  0xe9   : > { %v271_v36 = vsel %vm267_vm2, %v262_v30, 0.0  ;;  %v272_v37 = vsel %vm268_vm3, %v259_v32, 0.0 }
  0xea   : > { %v370_v39 = vsel %vm367_vm9, %v271_v36, %v347_v31  ;;  %v371_v40 = vsel %vm367_vm9, %v272_v37, %v348_v35 }
  0xeb   : > { %407 = vmatpush.msra.mxu0 %v370_v39  ;;  %427 = vmatpush.msra.mxu1 %v371_v40 }
  0xed   : > { %408 = vmatpush.msra.mxu0 %v368_v38  ;;  %428 = vmatpush.msra.mxu1 %v369_v41  ;;  %v381_v33 = vpop.permute.xlu0 %380 }
  0xee   : > { %536 = vmatmul.msk.f32.vlgmr.msra.gmra.mxu0 %vm383_vm13, %v376_v42  ;;  %538 = vmatmul.msk.f32.vlgmr.msra.gmra.mxu1 %vm383_vm13, %v376_v42 }
 0x16b   : > { %v410_v34 = vpop.f32.mrf.mxu0  ;;  %v430_v43 = vpop.f32.mrf.mxu1 }
 0x16c   : > { %v431_v44 = vadd.f32 %v430_v43, %v381_v33  ;;  %v411_v45 = vadd.f32 %v410_v34, %v381_v33 }
 0x16e   : > { %v435_v46 = vrot.slane %v431_v44, 4 }
 0x170   : > { %v436_v47 = vsel %vm367_vm9, %v411_v45, %v435_v46 }
 0x171   : > { %438 = vst [vmem:[%s188_s23] sm:$0xff] %v436_v47 }
 0x172   : > { %694 = shalt.err (!%p691_p4)
}
 0x173   : > { %548 = dma.vmem_to_hbm [thread:$0]  (%p814_p11), %s454_s4, 128, %s456_s5, %s440_s16  }
 0x174 PF: > { %s467_s26 = sand.u32 1, %s721_s12   ;;  %p967_p7 = scmp.ge.s32.totalorder %s733_s15, 2 }
 0x175   : > { %s468_s17 = scalar_lea.sflag [#allocation4], %s467_s26 }
 0x176   : > { %p555_p5 = pnand %p967_p7, %p818_p12 }
 0x178   : > { %p556_p8 = pneg %p555_p5 }
 0x17a   : > { %716 = dma.done.wait (%p556_p8), %s468_s17, 128  }
 0x17b   : > { %718 = vsyncadd (%p556_p8), %s468_s17, 4294967168  ;;  %p16_p10 = scmp.ge.s32.totalorder %s789_s18, 4   ;;  %s968_s12 = smov %s725_s13 }
 0x17c   : > { %s969_s13 = smov %s729_s14  ;;  %s970_s14 = smov %s801_s21 }
 0x17d   : > { %s971_s15 = smov %s789_s18  ;;  %18 = sbr.rel (!%p16_p10) target bundleno = 5 (0x5), region = 77 }
 0x182   :  { %474 = vsyncpa [#allocation3], 1 }
 0x183   :  { %476 = vsyncpa [#allocation3 + $0x1], 1 }
 0x184   :  { %477 = vsyncpa [#allocation4], 1 }
 0x185   :  { %479 = vsyncpa [#allocation4 + $0x1], 1 }

</bundles_post_ra>
